<compile_context>
chip_gen: v7x
topology: tpu7x:2x2x1
jax: 0.10.0
libtpu: 0.0.40
codegen_flags: <defaults>
</compile_context>

<pallas_src>
import functools

import jax
import jax.numpy as jnp
from jax.experimental import pallas as pl
from jax.experimental.pallas import tpu as pltpu


# ---------------------------------------------------------------------------
# Kernel 1: pooling reduction + bottleneck MLP -> per-(batch, channel) gate
# ---------------------------------------------------------------------------
def _gate_kernel(att_ref, w1a_ref, w1b_ref, b1_ref, w2_ref, b2_ref, x_ref,
                 gate_ref, pool_acc, *, inv_hw):
    # att_ref:  (B, A)        w1a_ref: (A, C16)   w1b_ref: (C, C16)
    # b1_ref:   (1, C16)      w2_ref:  (C16, C)   b2_ref:  (1, C)
    # x_ref:    (B, C, t_hw)  gate_ref: (B, C)    pool_acc: (B, C) f32 scratch
    k = pl.program_id(0)

    @pl.when(k == 0)
    def _():
        pool_acc[...] = jnp.zeros_like(pool_acc)

    pool_acc[...] += jnp.sum(x_ref[...], axis=-1)

    @pl.when(k == pl.num_programs(0) - 1)
    def _():
        pool = pool_acc[...] * inv_hw                                  # (B, C)
        h = (jnp.dot(att_ref[...], w1a_ref[...],
                     preferred_element_type=jnp.float32)
             + jnp.dot(pool, w1b_ref[...],
                       preferred_element_type=jnp.float32)
             + b1_ref[...])                                            # (B, C16)
        h = jnp.maximum(h, 0.0)                                        # ReLU
        g = jax.nn.sigmoid(
            jnp.dot(h, w2_ref[...], preferred_element_type=jnp.float32)
            + b2_ref[...])                                             # (B, C)
        gate_ref[...] = g.astype(gate_ref.dtype)


# ---------------------------------------------------------------------------
# Kernel 2: out[r, :] = gate[r] * x[r, :]   (lane-dense over H*W)
# ---------------------------------------------------------------------------
def _scale_kernel(gate_ref, x_ref, o_ref):
    # gate_ref: (B*C, 1)   x_ref / o_ref: (B*C, t_hw)
    o_ref[...] = x_ref[...] * gate_ref[...]


def _spatial_tile(hw, max_tile=2048):
    """Largest multiple-of-128 divisor of hw (<= max_tile); full dim otherwise."""
    if hw % 128 != 0 or hw <= max_tile:
        return hw
    for t in range(max_tile, 0, -128):
        if hw % t == 0:
            return t
    return hw


def al_ch_forward(inputs, attention, w1, b1, w2, b2):
    """inputs: (B, C, H, W) f32, attention: (B, A) f32.
    w1: (C//16, A + C), b1: (C//16,), w2: (C, C//16), b2: (C,)  (PyTorch Linear layout).
    Returns (B, C, H, W)."""
    B, C, H, W = inputs.shape
    A = attention.shape[1]
    C16 = w1.shape[0]
    HW = H * W

    x = inputs.astype(jnp.float32)
    att = attention.astype(jnp.float32)

    # Split FC1 weight into attention / pooled halves (replaces the concat).
    w1a_t = w1[:, :A].T.astype(jnp.float32)          # (A, C16)
    w1b_t = w1[:, A:].T.astype(jnp.float32)          # (C, C16)
    b1_2d = b1.reshape(1, C16).astype(jnp.float32)
    w2_t = w2.T.astype(jnp.float32)                  # (C16, C)
    b2_2d = b2.reshape(1, C).astype(jnp.float32)

    t_hw = _spatial_tile(HW)
    n_hw = HW // t_hw

    # --------------------------- kernel 1: gate ----------------------------
    x3 = x.reshape(B, C, HW)                         # free contiguous view
    gate = pl.pallas_call(
        functools.partial(_gate_kernel, inv_hw=1.0 / float(HW)),
        out_shape=jax.ShapeDtypeStruct((B, C), jnp.float32),
        grid_spec=pltpu.PrefetchScalarGridSpec(
            num_scalar_prefetch=0,
            grid=(n_hw,),
            in_specs=[
                pl.BlockSpec((B, A), lambda k: (0, 0)),
                pl.BlockSpec((A, C16), lambda k: (0, 0)),
                pl.BlockSpec((C, C16), lambda k: (0, 0)),
                pl.BlockSpec((1, C16), lambda k: (0, 0)),
                pl.BlockSpec((C16, C), lambda k: (0, 0)),
                pl.BlockSpec((1, C), lambda k: (0, 0)),
                pl.BlockSpec((B, C, t_hw), lambda k: (0, 0, k)),
            ],
            out_specs=pl.BlockSpec((B, C), lambda k: (0, 0)),
            scratch_shapes=[pltpu.VMEM((B, C), jnp.float32)],
        ),
        compiler_params=pltpu.CompilerParams(dimension_semantics=("arbitrary",)),
        cost_estimate=pl.CostEstimate(
            flops=B * C * HW + 2 * B * (A + C) * C16 + 2 * B * C16 * C,
            transcendentals=B * C,
            bytes_accessed=4 * (B * C * HW + B * A + (A + C) * C16 + C16 * C + B * C),
        ),
    )(att, w1a_t, w1b_t, b1_2d, w2_t, b2_2d, x3)

    # --------------------------- kernel 2: scale ---------------------------
    x2 = x.reshape(B * C, HW)                        # free contiguous view
    gate_flat = gate.reshape(B * C, 1)               # tiny
    out = pl.pallas_call(
        _scale_kernel,
        out_shape=jax.ShapeDtypeStruct((B * C, HW), jnp.float32),
        grid_spec=pltpu.PrefetchScalarGridSpec(
            num_scalar_prefetch=0,
            grid=(n_hw,),
            in_specs=[
                pl.BlockSpec((B * C, 1), lambda j: (0, 0)),
                pl.BlockSpec((B * C, t_hw), lambda j: (0, j)),
            ],
            out_specs=pl.BlockSpec((B * C, t_hw), lambda j: (0, j)),
        ),
        compiler_params=pltpu.CompilerParams(dimension_semantics=("parallel",)),
        cost_estimate=pl.CostEstimate(
            flops=B * C * HW,
            transcendentals=0,
            bytes_accessed=4 * (2 * B * C * HW + B * C),
        ),
    )(gate_flat, x2)

    return out.reshape(B, C, H, W)


if __name__ == "__main__":
    # AL_CH_Module(attention_size=8, channel_size=32); inputs (2, 32, 16, 16).
    B, C, H, W = 2, 32, 16, 16
    A = 8
    C16 = C // 16

    key = jax.random.PRNGKey(0)
    k_x, k_a, k_w1, k_b1, k_w2, k_b2 = jax.random.split(key, 6)

    inputs = jax.random.normal(k_x, (B, C, H, W), dtype=jnp.float32)
    attention = jax.random.normal(k_a, (B, A), dtype=jnp.float32)
    w1 = jax.random.normal(k_w1, (C16, A + C), dtype=jnp.float32) * 0.1
    b1 = jax.random.normal(k_b1, (C16,), dtype=jnp.float32) * 0.1
    w2 = jax.random.normal(k_w2, (C, C16), dtype=jnp.float32) * 0.1
    b2 = jax.random.normal(k_b2, (C,), dtype=jnp.float32) * 0.1

    out = al_ch_forward(inputs, attention, w1, b1, w2, b2)
    out = jax.block_until_ready(out)

    # pure-JAX reference of the PyTorch forward
    pool = jnp.mean(inputs, axis=(2, 3))                         # AdaptiveAvgPool2d(1).squeeze()
    in_fc = jnp.concatenate([attention, pool], axis=1)           # (B, A + C)
    h = jnp.maximum(in_fc @ w1.T + b1, 0.0)                      # FC_1 + ReLU
    gate_ref = jax.nn.sigmoid(h @ w2.T + b2)                     # FC_2 + sigmoid
    ref = inputs * gate_ref[:, :, None, None]

    assert out.shape == (B, C, H, W), out.shape
    max_err = float(jnp.max(jnp.abs(out - ref)))
    assert jnp.allclose(out, ref, atol=1e-4, rtol=1e-4), max_err
    print("KERNEL_OK")
</pallas_src>

<mosaic_0001>
module attributes {stable_mosaic.version = 11 : i64} {
  func.func @_gate_kernel(%arg0: i32, %arg1: memref<2x8xf32, #tpu.memory_space<vmem>>, %arg2: memref<8x2xf32, #tpu.memory_space<vmem>>, %arg3: memref<32x2xf32, #tpu.memory_space<vmem>>, %arg4: memref<1x2xf32, #tpu.memory_space<vmem>>, %arg5: memref<2x32xf32, #tpu.memory_space<vmem>>, %arg6: memref<1x32xf32, #tpu.memory_space<vmem>>, %arg7: memref<2x32x256xf32, #tpu.memory_space<vmem>>, %arg8: memref<2x32xf32, #tpu.memory_space<vmem>>, %arg9: memref<2x32xf32, #tpu.memory_space<vmem>>) attributes {dimension_semantics = [#tpu.dimension_semantics<arbitrary>], iteration_bounds = array<i64: 1>, scalar_prefetch = 0 : i64, scratch_operands = 1 : i64, tpu.core_type = #tpu.core_type<tc>, window_params = [{pipeline_mode = #tpu.pipeline_mode<synchronous>, transform_indices = @transform_0, window_bounds = array<i64: 2, 8>}, {pipeline_mode = #tpu.pipeline_mode<synchronous>, transform_indices = @transform_1, window_bounds = array<i64: 8, 2>}, {pipeline_mode = #tpu.pipeline_mode<synchronous>, transform_indices = @transform_2, window_bounds = array<i64: 32, 2>}, {pipeline_mode = #tpu.pipeline_mode<synchronous>, transform_indices = @transform_3, window_bounds = array<i64: 1, 2>}, {pipeline_mode = #tpu.pipeline_mode<synchronous>, transform_indices = @transform_4, window_bounds = array<i64: 2, 32>}, {pipeline_mode = #tpu.pipeline_mode<synchronous>, transform_indices = @transform_5, window_bounds = array<i64: 1, 32>}, {transform_indices = @transform_6, window_bounds = array<i64: 2, 32, 256>}, {pipeline_mode = #tpu.pipeline_mode<synchronous>, transform_indices = @transform_7, window_bounds = array<i64: 2, 32>}]} {
    %c0_i32 = arith.constant 0 : i32
    %0 = arith.cmpi eq, %arg0, %c0_i32 : i32
    %1 = arith.extui %0 : i1 to i32
    %c0_i32_0 = arith.constant 0 : i32
    %2 = arith.cmpi ne, %1, %c0_i32_0 : i32
    scf.if %2 {
      %cst_9 = arith.constant 0.000000e+00 : f32
      %11 = vector.broadcast %cst_9 : f32 to vector<2x32xf32>
      %c0_10 = arith.constant 0 : index
      %c0_11 = arith.constant 0 : index
      %12 = vector.load %arg9[%c0_10, %c0_11] : memref<2x32xf32, #tpu.memory_space<vmem>>, vector<2x32xf32>
      tpu.vector_store %arg9[%c0_10, %c0_11], %11 {strides = array<i32>} : memref<2x32xf32, #tpu.memory_space<vmem>>, vector<2x32xf32>,
    } else {
    }
    %c0 = arith.constant 0 : index
    %c0_1 = arith.constant 0 : index
    %3 = vector.load %arg9[%c0, %c0_1] : memref<2x32xf32, #tpu.memory_space<vmem>>, vector<2x32xf32>
    %c0_2 = arith.constant 0 : index
    %c0_3 = arith.constant 0 : index
    %c0_4 = arith.constant 0 : index
    %4 = vector.load %arg7[%c0_2, %c0_3, %c0_4] : memref<2x32x256xf32, #tpu.memory_space<vmem>>, vector<2x32x256xf32>
    %cst = arith.constant dense<0.000000e+00> : vector<2x32xf32>
    %5 = vector.multi_reduction <add>, %4, %cst [2] : vector<2x32x256xf32> to vector<2x32xf32>
    %6 = arith.addf %3, %5 : vector<2x32xf32>
    %c0_5 = arith.constant 0 : index
    %c0_6 = arith.constant 0 : index
    %7 = vector.load %arg9[%c0_5, %c0_6] : memref<2x32xf32, #tpu.memory_space<vmem>>, vector<2x32xf32>
    tpu.vector_store %arg9[%c0_5, %c0_6], %6 {strides = array<i32>} : memref<2x32xf32, #tpu.memory_space<vmem>>, vector<2x32xf32>,
    %c0_i32_7 = arith.constant 0 : i32
    %8 = arith.cmpi eq, %arg0, %c0_i32_7 : i32
    %9 = arith.extui %8 : i1 to i32
    %c0_i32_8 = arith.constant 0 : i32
    %10 = arith.cmpi ne, %9, %c0_i32_8 : i32
    scf.if %10 {
      %c0_9 = arith.constant 0 : index
      %c0_10 = arith.constant 0 : index
      %11 = vector.load %arg9[%c0_9, %c0_10] : memref<2x32xf32, #tpu.memory_space<vmem>>, vector<2x32xf32>
      %cst_11 = arith.constant 3.906250e-03 : f32
      %12 = vector.broadcast %cst_11 : f32 to vector<2x32xf32>
      %13 = arith.mulf %11, %12 : vector<2x32xf32>
      %c0_12 = arith.constant 0 : index
      %c0_13 = arith.constant 0 : index
      %14 = vector.load %arg1[%c0_12, %c0_13] : memref<2x8xf32, #tpu.memory_space<vmem>>, vector<2x8xf32>
      %c0_14 = arith.constant 0 : index
      %c0_15 = arith.constant 0 : index
      %15 = vector.load %arg2[%c0_14, %c0_15] : memref<8x2xf32, #tpu.memory_space<vmem>>, vector<8x2xf32>
      %cst_16 = arith.constant dense<0.000000e+00> : vector<2x2xf32>
      %16 = tpu.matmul %14, %15, %cst_16 {dimension_numbers = #tpu.dot_dimension_numbers<[1], [0], [0], [1], [0, 0, 1, 1], [], []>} : vector<2x8xf32>, vector<8x2xf32>, vector<2x2xf32> -> vector<2x2xf32>
      %c0_17 = arith.constant 0 : index
      %c0_18 = arith.constant 0 : index
      %17 = vector.load %arg3[%c0_17, %c0_18] : memref<32x2xf32, #tpu.memory_space<vmem>>, vector<32x2xf32>
      %cst_19 = arith.constant dense<0.000000e+00> : vector<2x2xf32>
      %18 = tpu.matmul %13, %17, %cst_19 {dimension_numbers = #tpu.dot_dimension_numbers<[1], [0], [0], [1], [0, 0, 1, 1], [], []>} : vector<2x32xf32>, vector<32x2xf32>, vector<2x2xf32> -> vector<2x2xf32>
      %19 = arith.addf %16, %18 : vector<2x2xf32>
      %c0_20 = arith.constant 0 : index
      %c0_21 = arith.constant 0 : index
      %20 = vector.load %arg4[%c0_20, %c0_21] : memref<1x2xf32, #tpu.memory_space<vmem>>, vector<1x2xf32>
      %21 = vector.broadcast %20 : vector<1x2xf32> to vector<2x2xf32>
      %22 = arith.addf %19, %21 : vector<2x2xf32>
      %cst_22 = arith.constant 0.000000e+00 : f32
      %23 = vector.broadcast %cst_22 : f32 to vector<2x2xf32>
      %24 = arith.maximumf %22, %23 : vector<2x2xf32>
      %c0_23 = arith.constant 0 : index
      %c0_24 = arith.constant 0 : index
      %25 = vector.load %arg5[%c0_23, %c0_24] : memref<2x32xf32, #tpu.memory_space<vmem>>, vector<2x32xf32>
      %cst_25 = arith.constant dense<0.000000e+00> : vector<2x32xf32>
      %26 = tpu.matmul %24, %25, %cst_25 {dimension_numbers = #tpu.dot_dimension_numbers<[1], [0], [0], [1], [0, 0, 1, 1], [], []>} : vector<2x2xf32>, vector<2x32xf32>, vector<2x32xf32> -> vector<2x32xf32>
      %c0_26 = arith.constant 0 : index
      %c0_27 = arith.constant 0 : index
      %27 = vector.load %arg6[%c0_26, %c0_27] : memref<1x32xf32, #tpu.memory_space<vmem>>, vector<1x32xf32>
      %28 = vector.broadcast %27 : vector<1x32xf32> to vector<2x32xf32>
      %29 = arith.addf %26, %28 : vector<2x32xf32>
      %30 = arith.negf %29 : vector<2x32xf32>
      %31 = math.exp %30 : vector<2x32xf32>
      %cst_28 = arith.constant 1.000000e+00 : f32
      %32 = vector.broadcast %cst_28 : f32 to vector<2x32xf32>
      %33 = arith.addf %32, %31 : vector<2x32xf32>
      %34 = arith.divf %32, %33 : vector<2x32xf32>
      %c0_29 = arith.constant 0 : index
      %c0_30 = arith.constant 0 : index
      %35 = vector.load %arg8[%c0_29, %c0_30] : memref<2x32xf32, #tpu.memory_space<vmem>>, vector<2x32xf32>
      tpu.vector_store %arg8[%c0_29, %c0_30], %34 {strides = array<i32>} : memref<2x32xf32, #tpu.memory_space<vmem>>, vector<2x32xf32>,
    } else {
    }
    return
  }
  func.func @transform_0(%arg0: i32) -> (i32, i32) {
    %c0_i32 = arith.constant 0 : i32
    %c0_i32_0 = arith.constant 0 : i32
    %c0_i32_1 = arith.constant 0 : i32
    return %c0_i32, %c0_i32_0 : i32, i32
  }
  func.func @transform_1(%arg0: i32) -> (i32, i32) {
    %c0_i32 = arith.constant 0 : i32
    %c0_i32_0 = arith.constant 0 : i32
    %c0_i32_1 = arith.constant 0 : i32
    return %c0_i32, %c0_i32_0 : i32, i32
  }
  func.func @transform_2(%arg0: i32) -> (i32, i32) {
    %c0_i32 = arith.constant 0 : i32
    %c0_i32_0 = arith.constant 0 : i32
    %c0_i32_1 = arith.constant 0 : i32
    return %c0_i32, %c0_i32_0 : i32, i32
  }
  func.func @transform_3(%arg0: i32) -> (i32, i32) {
    %c0_i32 = arith.constant 0 : i32
    %c0_i32_0 = arith.constant 0 : i32
    %c0_i32_1 = arith.constant 0 : i32
    return %c0_i32, %c0_i32_0 : i32, i32
  }
  func.func @transform_4(%arg0: i32) -> (i32, i32) {
    %c0_i32 = arith.constant 0 : i32
    %c0_i32_0 = arith.constant 0 : i32
    %c0_i32_1 = arith.constant 0 : i32
    return %c0_i32, %c0_i32_0 : i32, i32
  }
  func.func @transform_5(%arg0: i32) -> (i32, i32) {
    %c0_i32 = arith.constant 0 : i32
    %c0_i32_0 = arith.constant 0 : i32
    %c0_i32_1 = arith.constant 0 : i32
    return %c0_i32, %c0_i32_0 : i32, i32
  }
  func.func @transform_6(%arg0: i32) -> (i32, i32, i32) {
    %c0_i32 = arith.constant 0 : i32
    %c0_i32_0 = arith.constant 0 : i32
    %c0_i32_1 = arith.constant 0 : i32
    return %c0_i32, %c0_i32_0, %arg0 : i32, i32, i32
  }
  func.func @transform_7(%arg0: i32) -> (i32, i32) {
    %c0_i32 = arith.constant 0 : i32
    %c0_i32_0 = arith.constant 0 : i32
    %c0_i32_1 = arith.constant 0 : i32
    return %c0_i32, %c0_i32_0 : i32, i32
  }
}

</mosaic_0001>

<bundles_post_ra>
// kernel: tpu_custom_call.1
= control target key start
LH: loop header
LB: loop body
LE: loop exit
PB: predicated region body
PF: predicated region fallthrough
CT: control target
= control target key end

     0   :  { %12 = vsyncpa [#allocation4], 0  ;;  %s627_s0 = inlined_call_operand.vmem [shape: f32[2,8], index: 0, kind: input, shape index: {}]   ;;  %s628_s1 = inlined_call_operand.vmem [shape: f32[8,2], index: 1, kind: input, shape index: {}]   ;;  %s629_s2 = inlined_call_operand.vmem [shape: f32[32,2], index: 2, kind: input, shape index: {}]   ;;  %s630_s3 = inlined_call_operand.vmem [shape: f32[1,2], index: 3, kind: input, shape index: {}]   ;;  %s631_s4 = inlined_call_operand.vmem [shape: f32[2,32], index: 4, kind: input, shape index: {}]   ;;  %s632_s5 = inlined_call_operand.vmem [shape: f32[1,32], index: 5, kind: input, shape index: {}]   ;;  %s633_s6 = inlined_call_operand.hbm [shape: f32[2,32,256], index: 6, kind: input, shape index: {}]   ;;  %s634_s7 = inlined_call_operand.hbm [shape: f32[2,32], index: 7, kind: output, shape index: {}]  }
   0x1   :  { %13 = vsyncpa [#allocation5], 0  ;;  %s526_s24 = smov [#allocation3]   ;;  %s478_s28 = scalar_lea.hbm %s633_s6, 2048 }
   0x2   :  { %s31_s25 = sshll.u32 %s526_s24, 4  ;;  %p479_p0 = scmp.ne.s32.totalorder %s633_s6, %s478_s28  ;;  %s32_s25 = int_to_ptr.vmem [resolvable:$true] %s31_s25 }
   0x3   :  { %p482_p1 = scmp.lt.u32.totalorder %s478_s28, %s633_s6 }
   0x5   :  { %p484_p2 = pnand %p482_p1, %p479_p0 }
   0x7   :  { %487 = shalt.err (!%p484_p2)
}
   0x8   :  { %s488_s10 = scalar_lea.vmem %s32_s25, 2048  ;;  %p493_p4 = scmp.lt.s32.totalorder %s32_s25, %s32_s25 }
   0x9   :  { %p489_p3 = scmp.ne.s32.totalorder %s32_s25, %s488_s10  ;;  %p494_p5 = scmp.lt.s32.totalorder %s488_s10, %s488_s10 }
   0xb   :  { %p495_p6 = por %p494_p5, %p493_p4 }
   0xd   :  { %p496_p7 = pnand %p495_p6, %p489_p3 }
   0xf   :  { %499 = shalt.err (!%p496_p7)
}
  0x10   :  { %s527_s11 = smov 256   ;;  %s528_s12 = smov 16  }
  0x11   :  { %37 = dma.hbm_to_vmem [thread:$0]  %s633_s6, 2048, %s32_s25, [#allocation4], %s527_s11, %s527_s11, %s528_s12  }
  0x12   :  { %522 = dma.done.wait [#allocation4], 2048  }
  0x13   :  { %523 = vsyncadd [#allocation4], 4294965248  ;;  %v56_v0 = vld [vmem:[#allocation3 + $0x40] sm:$0xff]  ;;  %v57_v1 = vld [vmem:[#allocation3 + $0x48] sm:$0xff]  ;;  %vm45_vm0 = vcmask 254976   ;;  %v529_v24 = vmov 0.0   ;;  %v96_v34 = vlaneseq }
  0x14   :  { %v48_v2 = vld [vmem:[#allocation3] sm:$0xff]  ;;  %v76_v3 = vadd.f32 %v57_v1, %v56_v0  ;;  %v49_v4 = vld [vmem:[#allocation3 + $0x8] sm:$0xff]  ;;  %v58_v5 = vld [vmem:[#allocation3 + $0x50] sm:$0xff]  ;;  %46 = vst.msk [vmem:[#allocation2] sm:$0x3] %vm45_vm0, %v529_v24  ;;  %451 = vmatprep.subr.mxu1 %v529_v24  ;;  %vm233_vm1 = vcmask 64512  }
  0x15   :  { %v59_v6 = vld [vmem:[#allocation3 + $0x58] sm:$0xff]  ;;  %v64_v7 = vadd.f32 %v49_v4, %v48_v2  ;;  %v50_v8 = vld [vmem:[#allocation3 + $0x10] sm:$0xff]  ;;  %v60_v12 = vld [vmem:[#allocation3 + $0x60] sm:$0xff]  ;;  %v530_v28 = vmov 0.0|0.0   ;;  %vm531_vm2 = vmmov 0   ;;  %v97_v35 = vand.u32 127, %v96_v34 }
  0x16   :  { %v51_v9 = vld [vmem:[#allocation3 + $0x18] sm:$0xff]  ;;  %77 = vadd.xlane.f32.xlu1 %v76_v3  ;;  %v79_v10 = vadd.f32 %v59_v6, %v58_v5  ;;  %v61_v13 = vld [vmem:[#allocation3 + $0x68] sm:$0xff]  ;;  %v52_v14 = vld [vmem:[#allocation3 + $0x20] sm:$0xff]  ;;  %461 = vmatprep.subr.bf16.mxu0 %v530_v28  ;;  %v99_v40 = vshrl.u32 %v96_v34, 7  ;;  %vm107_vm3 = vcmask 130112   ;;  %vm114_vm4 = vcmask 195712  }
  0x17   :  { %65 = vadd.xlane.f32.xlu0 %v64_v7  ;;  %v67_v11 = vadd.f32 %v51_v9, %v50_v8  ;;  %v53_v15 = vld [vmem:[#allocation3 + $0x28] sm:$0xff]  ;;  %v82_v16 = vadd.f32 %v61_v13, %v60_v12  ;;  %v62_v18 = vld [vmem:[#allocation3 + $0x70] sm:$0xff]  ;;  %v63_v19 = vld [vmem:[#allocation3 + $0x78] sm:$0xff]  ;;  %453 = vmatprep.mubr.msk.f32.mxu1 %vm531_vm2, %v529_v24  ;;  %v102_v38 = vadd.s32 4294967288, %v97_v35  ;;  %v109_v39 = vadd.s32 4294967280, %v97_v35 }
  0x18   :  { %v70_v17 = vadd.f32 %v53_v15, %v52_v14  ;;  %v54_v20 = vld [vmem:[#allocation3 + $0x30] sm:$0xff]  ;;  %v55_v21 = vld [vmem:[#allocation3 + $0x38] sm:$0xff]  ;;  %v85_v22 = vadd.f32 %v63_v19, %v62_v18  ;;  %v156_v26 = vld [vmem:[%s629_s2 + $0x8] sm:$0xff]  ;;  %448 = vmatprep.mubr.msk.f32.mxu0 %vm531_vm2, %v529_v24  ;;  %v116_v44 = vadd.s32 4294967272, %v97_v35  ;;  %v100_v46 = vsub.s32 %v97_v35, %v99_v40 }
  0x19   :  { %v73_v23 = vadd.f32 %v55_v21, %v54_v20  ;;  %v155_v25 = vld [vmem:[%s629_s2] sm:$0xff]  ;;  %v157_v27 = vld [vmem:[%s629_s2 + $0x10] sm:$0xff]  ;;  %v158_v30 = vld [vmem:[%s629_s2 + $0x18] sm:$0xff]  ;;  %v105_v42 = vsub.s32 %v102_v38, %v99_v40  ;;  %v112_v45 = vsub.s32 %v109_v39, %v99_v40  ;;  %vm121_vm5 = vcmask 261312  }
  0x1a   :  { %80 = vadd.xlane.f32.xlu1 %v79_v10  ;;  %v462_v29 = vpack.c.bf16 %v156_v26, %v155_v25  ;;  %v154_v31 = vld [vmem:[%s628_s1] sm:$0xff]  ;;  %v465_v33 = vpack.c.bf16 %v158_v30, %v157_v27  ;;  %v119_v50 = vsub.s32 %v116_v44, %v99_v40  ;;  %vm142_vm6 = vcmask 1041409  }
  0x1b   :  { %68 = vadd.xlane.f32.xlu0 %v67_v11  ;;  %v153_v32 = vld [vmem:[%s627_s0] sm:$0x3]  ;;  %452 = vmatpush3.msra.mxu1 %v154_v31  ;;  %vm159_vm7 = vcmask 261120   ;;  %vm328_vm8 = vcmask 1041408   ;;  %vm324_vm9 = vcmask 15360  }
  0x1c   :  { %463 = vmatpush3.bf16.msra.mxu0 %v462_v29  ;;  %454 = vmatmul.mubr.msk.f32.vlgmr.msra.gmra.mrb[0].mxu1 %vm233_vm1, %v153_v32  ;;  %v47_v1 = vld [vmem:[#allocation2] sm:$0x3] }
  0x1d   :  { %464 = vmatprep.subr.bf16.mxu0 %v530_v28  ;;  %456 = vmatprep.subr.mxu1 %v529_v24  ;;  %v316_v9 = vld [vmem:[%s631_s4] sm:$0x3]  ;;  %s532_s4 = smov [#allocation6]  }
  0x1e   :  { %83 = vadd.xlane.f32.xlu1 %v82_v16  ;;  %458 = vmatprep.mubr.msk.f32.mxu1 %vm531_vm2, %v529_v24  ;;  %v426_v11 = vld [vmem:[%s630_s3] ss:$0 sm:$0xff]  ;;  %s415_s3 = sshll.u32 %s532_s4, 4  ;;  %s416_s3 = int_to_ptr.vmem [resolvable:$true] %s415_s3 }
  0x1f   :  { %71 = vadd.xlane.f32.xlu0 %v70_v17  ;;  %457 = vmatpush3.msk.msra.mxu1 %vm328_vm8, %v316_v9  ;;  %v427_v16 = vld [vmem:[%s632_s5] ss:$0 sm:$0xff]  ;;  %s500_s29 = scalar_lea.vmem %s416_s3, 32  ;;  %p505_p9 = scmp.lt.s32.totalorder %s416_s3, %s416_s3 }
  0x20   :  { %466 = vmatpush3.bf16.msra.mxu0 %v465_v33  ;;  %p501_p8 = scmp.ne.s32.totalorder %s416_s3, %s500_s29  ;;  %p506_p10 = scmp.lt.s32.totalorder %s500_s29, %s500_s29 }
  0x22   :  { %86 = vadd.xlane.f32.xlu1 %v85_v22  ;;  %p507_p11 = por %p506_p10, %p505_p9 }
  0x23   :  { %74 = vadd.xlane.f32.xlu0 %v73_v23 }
  0x24   :  { %p508_p12 = pnand %p507_p11, %p501_p8 }
  0xa3   :  { %v78_v36 = vpop.xlane.xlu1 %77 }
  0xa4   :  { %v66_v37 = vpop.xlane.xlu0 %65  ;;  %v126_v53 = vrot.slane %v78_v36, %v100_v46 }
  0xa5   :  { %v101_v55 = vrot.slane %v66_v37, %v100_v46 }
  0xa7   :  { %v81_v41 = vpop.xlane.xlu1 %80 }
  0xa8   :  { %v69_v43 = vpop.xlane.xlu0 %68  ;;  %v130_v48 = vrot.slane %v81_v41, %v105_v42 }
  0xa9   :  { %v106_v51 = vrot.slane %v69_v43, %v105_v42 }
  0xaa   :  { %v131_v57 = vsel %vm107_vm3, %v130_v48, %v126_v53 }
  0xab   :  { %v84_v47 = vpop.xlane.xlu1 %83  ;;  %v108_v60 = vsel %vm107_vm3, %v106_v51, %v101_v55 }
  0xac   :  { %v72_v49 = vpop.xlane.xlu0 %71  ;;  %v135_v52 = vrot.slane %v84_v47, %v112_v45 }
  0xad   :  { %v113_v54 = vrot.slane %v72_v49, %v112_v45 }
  0xae   :  { %v136_v61 = vsel %vm114_vm4, %v135_v52, %v131_v57 }
  0xaf   :  { %v87_v56 = vpop.xlane.xlu1 %86  ;;  %v115_v63 = vsel %vm114_vm4, %v113_v54, %v108_v60 }
  0xb0   :  { %v140_v58 = vrot.slane %v87_v56, %v119_v50  ;;  %v75_v59 = vpop.xlane.xlu0 %74 }
  0xb1   :  { %v120_v62 = vrot.slane %v75_v59, %v119_v50 }
  0xb2   :  { %v141_v0 = vsel %vm121_vm5, %v140_v58, %v136_v61 }
  0xb3   :  { %v122_v2 = vsel %vm121_vm5, %v120_v62, %v115_v63 }
  0xb4   :  { %v143_v3 = vsel %vm142_vm6, %v141_v0, %v122_v2 }
  0xb5   :  { %v145_v4 = vadd.f32 %v143_v3, %v47_v1 }
  0xb7   :  { %147 = vst.msk [vmem:[#allocation2] sm:$0x3] %vm45_vm0, %v145_v4 }
  0xbe   :  { %v151_v5 = vld [vmem:[#allocation2] sm:$0x3] }
  0xbf   :  { %v152_v6 = vmul.f32 0.00390625, %v151_v5 }
  0xc1   :  { %449 = vmatmul.mubr.msk.f32.vlgmr.msra.gmra.mrb[0].mxu0 %vm159_vm7, %v152_v6 }
  0xef   :  { %v303_v7 = vpop.f32.mrb[0].mxu1 }
  0xf0   :  { %v455_v8 = vpop.f32.mrb[1].mxu1 }
 0x194   :  { %v229_v10 = vpop.f32.mrb[0].mxu0 }
 0x195   :  { %v304_v12 = vadd.f32 %v303_v7, %v229_v10  ;;  %v450_v13 = vpop.f32.mrb[1].mxu0 }
 0x197   :  { %v314_v14 = vadd.f32 %v426_v11, %v304_v12 }
 0x199   :  { %v315_v15 = vmax.f32 %v314_v14, 0.0 }
 0x19b   :  { %459 = vmatmul.mubr.msk.f32.vlgmr.msra.gmra.mrb[2].mxu1 %vm324_vm9, %v315_v15 }
 0x26e   :  { %v398_v17 = vpop.f32.mrb[2].mxu1 }
 0x26f   :  { %v399_v18 = vadd.f32 %v427_v16, %v398_v17  ;;  %v460_v19 = vpop.f32.mrb[3].mxu1 }
 0x271   :  { %v430_v20 = vmul.f32 -1.442695, %v399_v18 }
 0x273   :  { %474 = vpow2.f32 %v430_v20 }
 0x27d   :  { %v475_v21 = vpop.eup %474 }
 0x27e   :  { %v405_v22 = vadd.f32 1.0, %v475_v21 }
 0x280   :  { %476 = vrcp.f32 %v405_v22 }
 0x28a   :  { %v477_v23 = vpop.eup %476 }
 0x28b   :  { %408 = vst.msk [vmem:[#allocation6] sm:$0x3] %vm45_vm0, %v477_v23 }
 0x28c   :  { %511 = shalt.err (!%p508_p12)
}
 0x28d   :  { %s512_s8 = scalar_lea.hbm %s634_s7, 32 }
 0x28e   :  { %p513_p13 = scmp.ne.s32.totalorder %s634_s7, %s512_s8  ;;  %p516_p0 = scmp.lt.u32.totalorder %s512_s8, %s634_s7 }
 0x290   :  { %p518_p1 = pnand %p516_p0, %p513_p13 }
 0x292   :  { %521 = shalt.err (!%p518_p1)
}
 0x293   :  { %418 = dma.vmem_to_hbm [thread:$0]  %s416_s3, 32, %s634_s7, [#allocation5]  }
 0x294   :  { %524 = dma.done.wait [#allocation5], 32  }
 0x295   :  { %525 = vsyncadd [#allocation5], 4294967264 }
 0x296   :  { %422 = vsyncpa [#allocation4], 1 }
 0x297   :  { %423 = vsyncpa [#allocation5], 1 }

</bundles_post_ra>
